<compile_context>
chip_gen: v7x
topology: tpu7x:2x2x1
jax: 0.10.0
libtpu: 0.0.40
codegen_flags: <defaults>
</compile_context>

<pallas_src>
import math

import jax
import jax.numpy as jnp
from jax.experimental import pallas as pl
from jax.experimental.pallas import tpu as pltpu


def _add_kernel(a_ref, b_ref, o_ref):
    o_ref[...] = a_ref[...] + b_ref[...]


def pallas_add(x80, x71):
    assert x80.shape == x71.shape and x80.dtype == x71.dtype
    orig_shape = x80.shape
    total = math.prod(orig_shape)

    # Widest lane-dense last dim (multiple of 128) that divides total -> zero padding.
    lane = None
    for cand in (1024, 512, 256, 128):
        if total % cand == 0:
            lane = cand
            break

    if lane is None:
        # Fallback (total not a multiple of 128): pad flat arrays, slice after.
        lane = 128
        padded_total = pl.cdiv(total, lane) * lane
        pad = padded_total - total
        a = jnp.pad(jnp.ravel(x80), (0, pad))
        b = jnp.pad(jnp.ravel(x71), (0, pad))
        rows = padded_total // lane
    else:
        rows = total // lane
        a = jnp.ravel(x80)
        b = jnp.ravel(x71)

    a2 = a.reshape(rows, lane)
    b2 = b.reshape(rows, lane)

    # Tile sizing: whole array in one block when small; otherwise ~2 MiB per
    # buffer (3 arrays x 2 double-buffers = ~12 MiB, well under the 16/32 MiB
    # scoped-VMEM defaults on v5e/v6e/v7x).
    bytes_per_elem = jnp.dtype(x80.dtype).itemsize
    max_tile_bytes = 2 * 1024 * 1024
    max_tile_rows = max(8, max_tile_bytes // (lane * bytes_per_elem))

    if rows <= max_tile_rows:
        tile_rows = rows  # single full-array block (exempt from 8-divisibility)
    else:
        tile_rows = int(max_tile_rows) - int(max_tile_rows) % 8
        rem = rows % tile_rows
        if rem:
            extra = tile_rows - rem
            a2 = jnp.pad(a2, ((0, extra), (0, 0)))
            b2 = jnp.pad(b2, ((0, extra), (0, 0)))
            rows = rows + extra

    grid = (rows // tile_rows,)
    out = pl.pallas_call(
        _add_kernel,
        out_shape=jax.ShapeDtypeStruct((rows, lane), x80.dtype),
        grid_spec=pltpu.PrefetchScalarGridSpec(
            num_scalar_prefetch=0,
            grid=grid,
            in_specs=[
                pl.BlockSpec((tile_rows, lane), lambda i: (i, 0)),
                pl.BlockSpec((tile_rows, lane), lambda i: (i, 0)),
            ],
            out_specs=pl.BlockSpec((tile_rows, lane), lambda i: (i, 0)),
        ),
        compiler_params=pltpu.CompilerParams(
            dimension_semantics=("parallel",),
        ),
    )(a2, b2)

    if rows * lane != total:
        out = out.reshape(-1)[:total]
    return out.reshape(orig_shape)


if __name__ == "__main__":
    key = jax.random.PRNGKey(0)
    k1, k2 = jax.random.split(key)
    # Same shape as the PyTorch module's inputs: [1, 32, 28, 28]
    x71 = jax.random.normal(k1, (1, 32, 28, 28), dtype=jnp.float32)
    x80 = jax.random.normal(k2, (1, 32, 28, 28), dtype=jnp.float32)

    out = pallas_add(x80, x71)
    jax.block_until_ready(out)

    expected = x80 + x71
    assert out.shape == expected.shape
    assert jnp.allclose(out, expected, atol=1e-6, rtol=1e-6)
    print("KERNEL_OK")
</pallas_src>

<mosaic_0001>
module attributes {stable_mosaic.version = 11 : i64} {
  func.func @_add_kernel(%arg0: i32, %arg1: memref<49x512xf32, #tpu.memory_space<vmem>>, %arg2: memref<49x512xf32, #tpu.memory_space<vmem>>, %arg3: memref<49x512xf32, #tpu.memory_space<vmem>>) attributes {dimension_semantics = [#tpu.dimension_semantics<parallel>], iteration_bounds = array<i64: 1>, scalar_prefetch = 0 : i64, scratch_operands = 0 : i64, tpu.core_type = #tpu.core_type<tc>, window_params = [{transform_indices = @transform_0, window_bounds = array<i64: 49, 512>}, {transform_indices = @transform_1, window_bounds = array<i64: 49, 512>}, {transform_indices = @transform_2, window_bounds = array<i64: 49, 512>}]} {
    %c0 = arith.constant 0 : index
    %c0_0 = arith.constant 0 : index
    %0 = vector.load %arg1[%c0, %c0_0] : memref<49x512xf32, #tpu.memory_space<vmem>>, vector<49x512xf32>
    %c0_1 = arith.constant 0 : index
    %c0_2 = arith.constant 0 : index
    %1 = vector.load %arg2[%c0_1, %c0_2] : memref<49x512xf32, #tpu.memory_space<vmem>>, vector<49x512xf32>
    %2 = arith.addf %0, %1 : vector<49x512xf32>
    %c0_3 = arith.constant 0 : index
    %c0_4 = arith.constant 0 : index
    %3 = vector.load %arg3[%c0_3, %c0_4] : memref<49x512xf32, #tpu.memory_space<vmem>>, vector<49x512xf32>
    tpu.vector_store %arg3[%c0_3, %c0_4], %2 {strides = array<i32>} : memref<49x512xf32, #tpu.memory_space<vmem>>, vector<49x512xf32>,
    return
  }
  func.func @transform_0(%arg0: i32) -> (i32, i32) {
    %c0_i32 = arith.constant 0 : i32
    %c0_i32_0 = arith.constant 0 : i32
    return %arg0, %c0_i32 : i32, i32
  }
  func.func @transform_1(%arg0: i32) -> (i32, i32) {
    %c0_i32 = arith.constant 0 : i32
    %c0_i32_0 = arith.constant 0 : i32
    return %arg0, %c0_i32 : i32, i32
  }
  func.func @transform_2(%arg0: i32) -> (i32, i32) {
    %c0_i32 = arith.constant 0 : i32
    %c0_i32_0 = arith.constant 0 : i32
    return %arg0, %c0_i32 : i32, i32
  }
}

</mosaic_0001>

<bundles_post_ra>
// kernel: tpu_custom_call.1
= control target key start
LH: loop header
LB: loop body
LE: loop exit
PB: predicated region body
PF: predicated region fallthrough
CT: control target
= control target key end

     0   :  { %7 = vsyncpa [#allocation3], 0  ;;  %s312_s0 = inlined_call_operand.hbm [shape: f32[49,512], index: 0, kind: input, shape index: {}]   ;;  %s313_s1 = inlined_call_operand.hbm [shape: f32[49,512], index: 1, kind: input, shape index: {}]   ;;  %s314_s2 = inlined_call_operand.hbm [shape: f32[49,512], index: 2, kind: output, shape index: {}]  }
   0x1   :  { %8 = vsyncpa [#allocation6], 0 }
   0x2   :  { %9 = vsyncpa [#allocation4], 0  ;;  %s247_s9 = smov [#allocation2]   ;;  %s175_s13 = scalar_lea.hbm %s312_s0, 3584 }
   0x3   :  { %s15_s10 = sshll.u32 %s247_s9, 4  ;;  %p176_p0 = scmp.ne.s32.totalorder %s312_s0, %s175_s13  ;;  %s16_s10 = int_to_ptr.vmem [resolvable:$true] %s15_s10 }
   0x4   :  { %p179_p1 = scmp.lt.u32.totalorder %s175_s13, %s312_s0 }
   0x6   :  { %p181_p2 = pnand %p179_p1, %p176_p0 }
   0x8   :  { %184 = shalt.err (!%p181_p2)
}
   0x9   :  { %s185_s18 = scalar_lea.vmem %s16_s10, 3584  ;;  %p190_p4 = scmp.lt.s32.totalorder %s16_s10, %s16_s10 }
   0xa   :  { %p186_p3 = scmp.ne.s32.totalorder %s16_s10, %s185_s18  ;;  %p191_p5 = scmp.lt.s32.totalorder %s185_s18, %s185_s18 }
   0xc   :  { %p192_p6 = por %p191_p5, %p190_p4 }
   0xe   :  { %p193_p7 = pnand %p192_p6, %p186_p3 }
  0x10   :  { %196 = shalt.err (!%p193_p7)
}
  0x11   :  { %s248_s19 = smov 512   ;;  %s249_s20 = smov 32  }
  0x12   :  { %21 = dma.hbm_to_vmem [thread:$0]  %s312_s0, 3584, %s16_s10, [#allocation3], %s248_s19, %s248_s19, %s249_s20  }
  0x13   :  { %s250_s23 = smov [#allocation5]   ;;  %s197_s27 = scalar_lea.hbm %s313_s1, 3584 }
  0x14   :  { %s27_s24 = sshll.u32 %s250_s23, 4  ;;  %p198_p8 = scmp.ne.s32.totalorder %s313_s1, %s197_s27  ;;  %s28_s24 = int_to_ptr.vmem [resolvable:$true] %s27_s24 }
  0x15   :  { %p201_p9 = scmp.lt.u32.totalorder %s197_s27, %s313_s1 }
  0x17   :  { %p203_p10 = pnand %p201_p9, %p198_p8 }
  0x19   :  { %206 = shalt.err (!%p203_p10)
}
  0x1a   :  { %s207_s4 = scalar_lea.vmem %s28_s24, 3584  ;;  %p212_p12 = scmp.lt.s32.totalorder %s28_s24, %s28_s24 }
  0x1b   :  { %p208_p11 = scmp.ne.s32.totalorder %s28_s24, %s207_s4  ;;  %p213_p13 = scmp.lt.s32.totalorder %s207_s4, %s207_s4 }
  0x1d   :  { %p214_p0 = por %p213_p13, %p212_p12 }
  0x1f   :  { %p215_p1 = pnand %p214_p0, %p208_p11 }
  0x21   :  { %218 = shalt.err (!%p215_p1)
}
  0x22   :  { %33 = dma.hbm_to_vmem [thread:$0]  %s313_s1, 3584, %s28_s24, [#allocation6], %s248_s19, %s248_s19, %s249_s20  }
  0x23   :  { %241 = dma.done.wait [#allocation3], 3584  }
  0x24   :  { %242 = vsyncadd [#allocation3], 4294963712 }
  0x25   :  { %243 = dma.done.wait [#allocation6], 3584  }
  0x26   :  { %244 = vsyncadd [#allocation6], 4294963712  ;;  %v40_v0 = vld [vmem:[#allocation2] sm:$0xff]  ;;  %v41_v2 = vld [vmem:[#allocation2 + $0x8] sm:$0xff]  ;;  %s251_s1 = smov [#allocation7]  }
  0x27   :  { %v68_v1 = vld [vmem:[#allocation5] sm:$0xff]  ;;  %v69_v4 = vld [vmem:[#allocation5 + $0x8] sm:$0xff]  ;;  %v42_v5 = vld [vmem:[#allocation2 + $0x10] sm:$0xff]  ;;  %s157_s6 = sshll.u32 %s251_s1, 4  ;;  %s158_s6 = int_to_ptr.vmem [resolvable:$true] %s157_s6 }
  0x28   :  { %v96_v3 = vadd.f32 %v68_v1, %v40_v0  ;;  %v70_v6 = vld [vmem:[#allocation5 + $0x10] sm:$0xff]  ;;  %v97_v7 = vadd.f32 %v69_v4, %v41_v2  ;;  %v43_v9 = vld [vmem:[#allocation2 + $0x18] sm:$0xff]  ;;  %v44_v11 = vld [vmem:[#allocation2 + $0x20] sm:$0xff]  ;;  %s219_s7 = scalar_lea.vmem %s158_s6, 3584  ;;  %p224_p3 = scmp.lt.s32.totalorder %s158_s6, %s158_s6 }
  0x29   :  { %v98_v8 = vadd.f32 %v70_v6, %v42_v5  ;;  %v71_v10 = vld [vmem:[#allocation5 + $0x18] sm:$0xff]  ;;  %v72_v13 = vld [vmem:[#allocation5 + $0x20] sm:$0xff]  ;;  %v45_v14 = vld [vmem:[#allocation2 + $0x28] sm:$0xff]  ;;  %p220_p2 = scmp.ne.s32.totalorder %s158_s6, %s219_s7  ;;  %p225_p4 = scmp.lt.s32.totalorder %s219_s7, %s219_s7 }
  0x2a   :  { %124 = vst [vmem:[#allocation7] sm:$0xff] %v96_v3  ;;  %v99_v12 = vadd.f32 %v71_v10, %v43_v9  ;;  %v73_v15 = vld [vmem:[#allocation5 + $0x28] sm:$0xff]  ;;  %125 = vst [vmem:[#allocation7 + $0x8] sm:$0xff] %v97_v7  ;;  %v100_v16 = vadd.f32 %v72_v13, %v44_v11  ;;  %v46_v18 = vld [vmem:[#allocation2 + $0x30] sm:$0xff] }
  0x2b   :  { %126 = vst [vmem:[#allocation7 + $0x10] sm:$0xff] %v98_v8  ;;  %v101_v17 = vadd.f32 %v73_v15, %v45_v14  ;;  %v74_v19 = vld [vmem:[#allocation5 + $0x30] sm:$0xff]  ;;  %v47_v20 = vld [vmem:[#allocation2 + $0x38] sm:$0xff]  ;;  %v48_v23 = vld [vmem:[#allocation2 + $0x40] sm:$0xff]  ;;  %p226_p5 = por %p225_p4, %p224_p3 }
  0x2c   :  { %127 = vst [vmem:[#allocation7 + $0x18] sm:$0xff] %v99_v12  ;;  %v102_v21 = vadd.f32 %v74_v19, %v46_v18  ;;  %v75_v22 = vld [vmem:[#allocation5 + $0x38] sm:$0xff]  ;;  %v76_v24 = vld [vmem:[#allocation5 + $0x40] sm:$0xff]  ;;  %128 = vst [vmem:[#allocation7 + $0x20] sm:$0xff] %v100_v16 }
  0x2d   :  { %129 = vst [vmem:[#allocation7 + $0x28] sm:$0xff] %v101_v17  ;;  %v103_v25 = vadd.f32 %v75_v22, %v47_v20  ;;  %v104_v26 = vadd.f32 %v76_v24, %v48_v23  ;;  %v49_v27 = vld [vmem:[#allocation2 + $0x48] sm:$0xff]  ;;  %v50_v29 = vld [vmem:[#allocation2 + $0x50] sm:$0xff]  ;;  %v51_v32 = vld [vmem:[#allocation2 + $0x58] sm:$0xff]  ;;  %p227_p6 = pnand %p226_p5, %p220_p2 }
  0x2e   :  { %v77_v28 = vld [vmem:[#allocation5 + $0x48] sm:$0xff]  ;;  %130 = vst [vmem:[#allocation7 + $0x30] sm:$0xff] %v102_v21  ;;  %v78_v31 = vld [vmem:[#allocation5 + $0x50] sm:$0xff]  ;;  %v79_v33 = vld [vmem:[#allocation5 + $0x58] sm:$0xff] }
  0x2f   :  { %v105_v30 = vadd.f32 %v77_v28, %v49_v27  ;;  %131 = vst [vmem:[#allocation7 + $0x38] sm:$0xff] %v103_v25  ;;  %132 = vst [vmem:[#allocation7 + $0x40] sm:$0xff] %v104_v26  ;;  %v106_v34 = vadd.f32 %v78_v31, %v50_v29  ;;  %v107_v35 = vadd.f32 %v79_v33, %v51_v32  ;;  %v52_v36 = vld [vmem:[#allocation2 + $0x60] sm:$0xff]  ;;  %v53_v38 = vld [vmem:[#allocation2 + $0x68] sm:$0xff] }
  0x30   :  { %v80_v37 = vld [vmem:[#allocation5 + $0x60] sm:$0xff]  ;;  %v81_v40 = vld [vmem:[#allocation5 + $0x68] sm:$0xff]  ;;  %v54_v41 = vld [vmem:[#allocation2 + $0x70] sm:$0xff] }
  0x31   :  { %133 = vst [vmem:[#allocation7 + $0x48] sm:$0xff] %v105_v30  ;;  %v108_v39 = vadd.f32 %v80_v37, %v52_v36  ;;  %v82_v42 = vld [vmem:[#allocation5 + $0x70] sm:$0xff]  ;;  %134 = vst [vmem:[#allocation7 + $0x50] sm:$0xff] %v106_v34  ;;  %v109_v43 = vadd.f32 %v81_v40, %v53_v38  ;;  %v55_v45 = vld [vmem:[#allocation2 + $0x78] sm:$0xff] }
  0x32   :  { %135 = vst [vmem:[#allocation7 + $0x58] sm:$0xff] %v107_v35  ;;  %v110_v44 = vadd.f32 %v82_v42, %v54_v41  ;;  %v83_v46 = vld [vmem:[#allocation5 + $0x78] sm:$0xff]  ;;  %v56_v47 = vld [vmem:[#allocation2 + $0x80] sm:$0xff]  ;;  %v57_v50 = vld [vmem:[#allocation2 + $0x88] sm:$0xff] }
  0x33   :  { %136 = vst [vmem:[#allocation7 + $0x60] sm:$0xff] %v108_v39  ;;  %v111_v48 = vadd.f32 %v83_v46, %v55_v45  ;;  %v84_v49 = vld [vmem:[#allocation5 + $0x80] sm:$0xff]  ;;  %v85_v51 = vld [vmem:[#allocation5 + $0x88] sm:$0xff]  ;;  %137 = vst [vmem:[#allocation7 + $0x68] sm:$0xff] %v109_v43 }
  0x34   :  { %138 = vst [vmem:[#allocation7 + $0x70] sm:$0xff] %v110_v44  ;;  %v112_v52 = vadd.f32 %v84_v49, %v56_v47  ;;  %v113_v53 = vadd.f32 %v85_v51, %v57_v50  ;;  %v58_v54 = vld [vmem:[#allocation2 + $0x90] sm:$0xff]  ;;  %v59_v56 = vld [vmem:[#allocation2 + $0x98] sm:$0xff]  ;;  %v60_v59 = vld [vmem:[#allocation2 + $0xa0] sm:$0xff] }
  0x35   :  { %v86_v55 = vld [vmem:[#allocation5 + $0x90] sm:$0xff]  ;;  %139 = vst [vmem:[#allocation7 + $0x78] sm:$0xff] %v111_v48  ;;  %v87_v58 = vld [vmem:[#allocation5 + $0x98] sm:$0xff]  ;;  %v88_v60 = vld [vmem:[#allocation5 + $0xa0] sm:$0xff] }
  0x36   :  { %v114_v57 = vadd.f32 %v86_v55, %v58_v54  ;;  %140 = vst [vmem:[#allocation7 + $0x80] sm:$0xff] %v112_v52  ;;  %141 = vst [vmem:[#allocation7 + $0x88] sm:$0xff] %v113_v53  ;;  %v115_v61 = vadd.f32 %v87_v58, %v59_v56  ;;  %v116_v62 = vadd.f32 %v88_v60, %v60_v59  ;;  %v61_v63 = vld [vmem:[#allocation2 + $0xa8] sm:$0xff]  ;;  %v62_v1 = vld [vmem:[#allocation2 + $0xb0] sm:$0xff] }
  0x37   :  { %v89_v0 = vld [vmem:[#allocation5 + $0xa8] sm:$0xff]  ;;  %v90_v3 = vld [vmem:[#allocation5 + $0xb0] sm:$0xff]  ;;  %v63_v4 = vld [vmem:[#allocation2 + $0xb8] sm:$0xff] }
  0x38   :  { %142 = vst [vmem:[#allocation7 + $0x90] sm:$0xff] %v114_v57  ;;  %v117_v2 = vadd.f32 %v89_v0, %v61_v63  ;;  %v91_v5 = vld [vmem:[#allocation5 + $0xb8] sm:$0xff]  ;;  %143 = vst [vmem:[#allocation7 + $0x98] sm:$0xff] %v115_v61  ;;  %v118_v6 = vadd.f32 %v90_v3, %v62_v1  ;;  %v64_v8 = vld [vmem:[#allocation2 + $0xc0] sm:$0x1] }
  0x39   :  { %144 = vst [vmem:[#allocation7 + $0xa0] sm:$0xff] %v116_v62  ;;  %v119_v7 = vadd.f32 %v91_v5, %v63_v4  ;;  %v92_v9 = vld [vmem:[#allocation5 + $0xc0] sm:$0x1]  ;;  %v65_v10 = vld [vmem:[#allocation2 + $0xc8] sm:$0x1] }
  0x3a   :  { %145 = vst [vmem:[#allocation7 + $0xa8] sm:$0xff] %v117_v2  ;;  %v120_v11 = vadd.f32 %v92_v9, %v64_v8  ;;  %v93_v12 = vld [vmem:[#allocation5 + $0xc8] sm:$0x1]  ;;  %v66_v13 = vld [vmem:[#allocation2 + $0xd0] sm:$0x1]  ;;  %146 = vst [vmem:[#allocation7 + $0xb0] sm:$0xff] %v118_v6 }
  0x3b   :  { %v94_v14 = vld [vmem:[#allocation5 + $0xd0] sm:$0x1]  ;;  %147 = vst [vmem:[#allocation7 + $0xb8] sm:$0xff] %v119_v7  ;;  %v121_v15 = vadd.f32 %v93_v12, %v65_v10  ;;  %v67_v17 = vld [vmem:[#allocation2 + $0xd8] sm:$0x1] }
  0x3c   :  { %v122_v16 = vadd.f32 %v94_v14, %v66_v13  ;;  %v95_v18 = vld [vmem:[#allocation5 + $0xd8] sm:$0x1]  ;;  %148 = vst [vmem:[#allocation7 + $0xc0] sm:$0x1] %v120_v11 }
  0x3d   :  { %v123_v19 = vadd.f32 %v95_v18, %v67_v17  ;;  %149 = vst [vmem:[#allocation7 + $0xc8] sm:$0x1] %v121_v15 }
  0x3e   :  { %150 = vst [vmem:[#allocation7 + $0xd0] sm:$0x1] %v122_v16 }
  0x3f   :  { %151 = vst [vmem:[#allocation7 + $0xd8] sm:$0x1] %v123_v19 }
  0x40   :  { %230 = shalt.err (!%p227_p6)
}
  0x41   :  { %s231_s10 = scalar_lea.hbm %s314_s2, 3584 }
  0x42   :  { %p232_p7 = scmp.ne.s32.totalorder %s314_s2, %s231_s10  ;;  %p235_p8 = scmp.lt.u32.totalorder %s231_s10, %s314_s2 }
  0x44   :  { %p237_p9 = pnand %p235_p8, %p232_p7 }
  0x46   :  { %240 = shalt.err (!%p237_p9)
}
  0x47   :  { %163 = dma.vmem_to_hbm [thread:$0]  %s158_s6, 3584, %s314_s2, [#allocation4], %s248_s19, %s248_s19, %s249_s20  }
  0x48   :  { %245 = dma.done.wait [#allocation4], 3584  }
  0x49   :  { %246 = vsyncadd [#allocation4], 4294963712 }
  0x4a   :  { %167 = vsyncpa [#allocation3], 1 }
  0x4b   :  { %168 = vsyncpa [#allocation6], 1 }
  0x4c   :  { %169 = vsyncpa [#allocation4], 1 }

</bundles_post_ra>
